<compile_context>
chip_gen: v5e
topology: v5e:2x2
jax: 0.10.0
libtpu: 0.0.40
codegen_flags: <defaults>
</compile_context>

<pallas_src>
import math

import jax
import jax.numpy as jnp
from jax.experimental import pallas as pl
from jax.experimental.pallas import tpu as pltpu


# ---------------------------------------------------------------------------
# Parameter construction (deterministic, mirrors nn.Module.__init__)
# ---------------------------------------------------------------------------
def make_sinusoidal_pe(max_seq_len: int, d: int) -> jnp.ndarray:
    """Builds the sinusoidal table exactly like the torch __init__ does.

    For even `d` the initial 0.1*randn is fully overwritten by sin/cos, so the
    table is deterministic regardless of RNG."""
    position = jnp.arange(max_seq_len, dtype=jnp.float32)[:, None]          # (L, 1)
    div_term = jnp.exp(
        jnp.arange(0, d, 2, dtype=jnp.float32) * -(math.log(10000.0) / d)
    )                                                                       # (d/2,)
    pe = jnp.zeros((max_seq_len, d), dtype=jnp.float32)
    pe = pe.at[:, 0::2].set(jnp.sin(position * div_term))
    pe = pe.at[:, 1::2].set(jnp.cos(position * div_term))
    return pe


# ---------------------------------------------------------------------------
# Pallas kernel: pure batch broadcast of one flattened table row.
# ---------------------------------------------------------------------------
def _pe_broadcast_kernel(row_ref, out_ref):
    """row_ref: (1, S*D) flattened (pre-shifted) positional table.
       out_ref: (TB, S*D) output block — TB batch copies, lane-dense,
                unmasked full-width stores."""
    out_ref[...] = jnp.broadcast_to(row_ref[...], out_ref.shape)


def _pick_tb(B: int, row_bytes: int, target_block_bytes: int = 8 * 1024 * 1024) -> int:
    """Batch rows per grid step: as many as fit a ~8 MiB (per-buffer) output
    block; multiple of 8 unless the block spans the whole batch."""
    rows = max(1, target_block_bytes // max(1, row_bytes))
    if rows >= B:
        return B
    tb = max(8, (rows // 8) * 8)
    return min(tb, B)


def positional_embedding_akt(x: jnp.ndarray,
                             is_interaction: int,
                             pe: jnp.ndarray,
                             pe_inter: jnp.ndarray) -> jnp.ndarray:
    """Pallas implementation of PositionalEmbedding_AKT.forward.

    x:  (B, S, *) -- only B and S are used, like the torch module.
    is_interaction: Python int (0 or 1), resolved at trace time like the
                    torch `if` on a Python scalar.
    """
    B = int(x.shape[0])
    S = int(x.shape[1])

    # --- build the (pre-shifted) table once in the wrapper (tiny O(S*D) work) ---
    if is_interaction == 1:
        D = int(pe_inter.shape[1])
        if S == 1:
            table = jnp.zeros((1, D), dtype=pe_inter.dtype)
        else:
            table = jnp.concatenate(
                [jnp.zeros((1, D), dtype=pe_inter.dtype), pe_inter[: S - 1]], axis=0
            )                                                 # (S, 4*d)
    else:
        D = int(pe.shape[1])
        table = pe[:S]                                        # (S, d)

    # Lane-dense presentation: one row of S*D lanes (multiple of 128 whenever
    # D is, and >= 128 even for d=32 with modest S).
    row = table.reshape(1, S * D)
    row_bytes = S * D * row.dtype.itemsize

    TB = _pick_tb(B, row_bytes)
    grid = (pl.cdiv(B, TB),)

    out_flat = pl.pallas_call(
        _pe_broadcast_kernel,
        out_shape=jax.ShapeDtypeStruct((B, S * D), table.dtype),
        grid_spec=pltpu.PrefetchScalarGridSpec(
            num_scalar_prefetch=0,
            grid=grid,
            in_specs=[
                # Grid-invariant tiny table row; re-DMA cost is negligible.
                pl.BlockSpec((1, S * D), lambda b: (0, 0)),
            ],
            out_specs=pl.BlockSpec((TB, S * D), lambda b: (b, 0)),
        ),
        compiler_params=pltpu.CompilerParams(
            dimension_semantics=("parallel",),
            vmem_limit_bytes=32 * 1024 * 1024,
        ),
    )(row)

    return out_flat.reshape(B, S, D)


# ---------------------------------------------------------------------------
# Reference (pure JAX) for verification
# ---------------------------------------------------------------------------
def positional_embedding_akt_ref(x, is_interaction, pe, pe_inter):
    B, S = x.shape[0], x.shape[1]
    if is_interaction == 1:
        temp_shifted = pe_inter[None, :S - 1]                      # (1, S-1, 4d)
        shift_val = jnp.zeros((1, 1, pe_inter.shape[1]), pe_inter.dtype)
        temp_pe = jnp.concatenate([shift_val, temp_shifted], axis=1)
    else:
        temp_pe = pe[None, :S]
    return jnp.tile(temp_pe, (B, 1, 1))


# ---------------------------------------------------------------------------
if __name__ == "__main__":
    embedding_size = 32
    max_seq_len = 20
    B, S = 2, 8

    d_model = embedding_size
    d_model_inter = 4 * embedding_size

    pe = make_sinusoidal_pe(max_seq_len, d_model)              # (20, 32)
    pe_inter = make_sinusoidal_pe(max_seq_len, d_model_inter)  # (20, 128)

    key = jax.random.PRNGKey(0)
    x = jax.random.normal(key, (B, S, d_model), dtype=jnp.float32)

    ok = True
    for flag in (0, 1):
        out = positional_embedding_akt(x, flag, pe, pe_inter)
        out = jax.block_until_ready(out)
        ref = positional_embedding_akt_ref(x, flag, pe, pe_inter)
        if out.shape != ref.shape or not jnp.allclose(out, ref, atol=1e-6):
            ok = False

    if ok:
        print("KERNEL_OK")
</pallas_src>

<mosaic_0001>
module attributes {stable_mosaic.version = 11 : i64} {
  func.func @_pe_broadcast_kernel(%arg0: i32, %arg1: memref<1x256xf32, #tpu.memory_space<vmem>>, %arg2: memref<2x256xf32, #tpu.memory_space<vmem>>) attributes {dimension_semantics = [#tpu.dimension_semantics<parallel>], iteration_bounds = array<i64: 1>, scalar_prefetch = 0 : i64, scratch_operands = 0 : i64, tpu.core_type = #tpu.core_type<tc>, window_params = [{pipeline_mode = #tpu.pipeline_mode<synchronous>, transform_indices = @transform_0, window_bounds = array<i64: 1, 256>}, {transform_indices = @transform_1, window_bounds = array<i64: 2, 256>}]} {
    %c0 = arith.constant 0 : index
    %c0_0 = arith.constant 0 : index
    %0 = vector.load %arg1[%c0, %c0_0] : memref<1x256xf32, #tpu.memory_space<vmem>>, vector<1x256xf32>
    %1 = vector.shape_cast %0 : vector<1x256xf32> to vector<1x256xf32>
    %2 = vector.broadcast %1 : vector<1x256xf32> to vector<2x256xf32>
    %c0_1 = arith.constant 0 : index
    %c0_2 = arith.constant 0 : index
    %3 = vector.load %arg2[%c0_1, %c0_2] : memref<2x256xf32, #tpu.memory_space<vmem>>, vector<2x256xf32>
    tpu.vector_store %arg2[%c0_1, %c0_2], %2 {strides = array<i32>} : memref<2x256xf32, #tpu.memory_space<vmem>>, vector<2x256xf32>,
    return
  }
  func.func @transform_0(%arg0: i32) -> (i32, i32) {
    %c0_i32 = arith.constant 0 : i32
    %c0_i32_0 = arith.constant 0 : i32
    %c0_i32_1 = arith.constant 0 : i32
    return %c0_i32, %c0_i32_0 : i32, i32
  }
  func.func @transform_1(%arg0: i32) -> (i32, i32) {
    %c0_i32 = arith.constant 0 : i32
    %c0_i32_0 = arith.constant 0 : i32
    return %arg0, %c0_i32 : i32, i32
  }
}

</mosaic_0001>

<bundles_post_ra>
// kernel: tpu_custom_call.1
= control target key start
LH: loop header
LB: loop body
LE: loop exit
PB: predicated region body
PF: predicated region fallthrough
CT: control target
= control target key end

     0   :  { %6 = vsyncpa [#allocation3], 0  ;;  %s121_s0 = inlined_call_operand.hbm [shape: f32[1,256], index: 0, kind: input, shape index: {}]   ;;  %s122_s1 = inlined_call_operand.hbm [shape: f32[2,256], index: 1, kind: output, shape index: {}]  }
   0x1   :  { %7 = vsyncpa [#allocation4], 0  ;;  %s13_s8 = sshll.u32 %s121_s0, 4  ;;  %s103_s9 = smov [#allocation2]   ;;  %s14_s8 = int_to_ptr.hbm [resolvable:$true] %s13_s8 }
   0x2   :  { %s15_s10 = sshll.u32 %s103_s9, 4  ;;  %s16_s10 = int_to_ptr.vmem [resolvable:$true] %s15_s10 }
   0x3   :  { %18 = dma.hbm_to_vmem [thread:$0]  %s14_s8, 32, %s16_s10, [#allocation3]  }
   0x4   :  { %99 = dma.done.wait [#allocation3], 32  }
   0x5   :  { %100 = vsyncadd [#allocation3], 4294967264  ;;  %v23_v0 = vld [vmem:[#allocation2] sm:$0x3]  ;;  %s104_s11 = smov [#allocation5]   ;;  %s39_s15 = sshll.u32 %s122_s1, 4  ;;  %s40_s15 = int_to_ptr.hbm [resolvable:$true] %s39_s15 }
   0x6   :  { %v25_v1 = vperm.slane %v23_v0, 0  ;;  %v26_v2 = vperm.slane %v23_v0, 1  ;;  %s37_s12 = sshll.u32 %s104_s11, 4  ;;  %vm28_vm0 = vcmask 1041408   ;;  %s38_s12 = int_to_ptr.vmem [resolvable:$true] %s37_s12 }
   0x8   :  { %v27_v3 = vrot.slane %v26_v2, 6 }
   0xa   :  { %v29_v4 = vsel %vm28_vm0, %v25_v1, %v27_v3 }
   0xb   :  { %31 = vst [vmem:[#allocation5] sm:$0xf] %v29_v4 }
   0xc   :  { %42 = dma.vmem_to_hbm [thread:$0]  %s38_s12, 64, %s40_s15, [#allocation4]  }
   0xd   :  { %101 = dma.done.wait [#allocation4], 64  }
   0xe   :  { %102 = vsyncadd [#allocation4], 4294967232 }
   0xf   :  { %47 = vsyncpa [#allocation3], 1 }
  0x10   :  { %48 = vsyncpa [#allocation4], 1 }

</bundles_post_ra>
